<compile_context>
chip_gen: v5e
topology: v5e:2x2
jax: 0.10.0
libtpu: 0.0.40
codegen_flags: <defaults>
</compile_context>

<pallas_src>
import jax
import jax.numpy as jnp
from jax.experimental import pallas as pl
from jax.experimental.pallas import tpu as pltpu

HID1 = 128
HID2 = 64
_LANE = 128
_SUBLANE = 8
_VMEM_LIMIT = 32 * 1024 * 1024        # explicit scoped limit (>= v5e's 16 MiB default,
                                      # <= every generation's physical VMEM)
_VMEM_TILE_BUDGET = 24 * 1024 * 1024  # what tiles are sized against (8 MiB headroom)


def _round_up(n, m):
    return ((n + m - 1) // m) * m


def _round_down(n, m):
    return (n // m) * m


def _cdiv(a, b):
    return (a + b - 1) // b


def _num_tensorcores():
    """v7x has 2 TensorCores per chip; v5e/v6e have 1. Defensive device-kind check."""
    try:
        kind = str(getattr(jax.devices()[0], "device_kind", "")).lower()
    except Exception:
        return 1
    return 2 if "v7" in kind else 1


def dqn_kernel(x_ref, w1_ref, b1_ref, w2_ref, b2_ref, w3_ref, b3_ref, out_ref):
    # fc1 + ReLU  (bf16 operands, f32 accumulation on the MXU).
    # astype is a no-op if x is already bf16 in HBM.
    x = x_ref[...].astype(jnp.bfloat16)
    h1 = jnp.dot(x, w1_ref[...], preferred_element_type=jnp.float32)
    h1 = jnp.maximum(h1 + b1_ref[...], 0.0)
    # fc2 + ReLU (hidden2 zero-padded 64 -> 128: relu(0+0)=0, exact)
    h2 = jnp.dot(h1.astype(jnp.bfloat16), w2_ref[...],
                 preferred_element_type=jnp.float32)
    h2 = jnp.maximum(h2 + b2_ref[...], 0.0)
    # fc3 (no activation; padded w3 rows are zero, contribute nothing)
    y = jnp.dot(h2.astype(jnp.bfloat16), w3_ref[...],
                preferred_element_type=jnp.float32)
    out_ref[...] = (y + b3_ref[...]).astype(out_ref.dtype)


def init_dqn_params(key, input_size, output_size):
    """Deterministic init mimicking nn.Linear's U(-1/sqrt(fan_in), 1/sqrt(fan_in))."""
    def linear(k, fan_in, fan_out):
        kw, kb = jax.random.split(k)
        bound = 1.0 / jnp.sqrt(jnp.float32(fan_in))
        w = jax.random.uniform(kw, (fan_in, fan_out), jnp.float32, -bound, bound)
        b = jax.random.uniform(kb, (1, fan_out), jnp.float32, -bound, bound)
        return w, b

    k1, k2, k3 = jax.random.split(key, 3)
    w1, b1 = linear(k1, input_size, HID1)
    w2, b2 = linear(k2, HID1, HID2)
    w3, b3 = linear(k3, HID2, output_size)
    return {"w1": w1, "b1": b1, "w2": w2, "b2": b2, "w3": w3, "b3": b3}


def pack_dqn_params(params):
    """Zero-pad hidden2 64->128 (w2 cols, b2, w3 rows), cast weights to bf16.

    The output dim is deliberately NOT padded: the output block uses the true d_out as a
    full-width dim, avoiding inflated writeback for small action spaces. Zero padding of
    the hidden layer preserves semantics exactly.
    """
    w1, b1 = params["w1"], params["b1"]
    w2, b2 = params["w2"], params["b2"]
    w3, b3 = params["w3"], params["b3"]
    h2_pad = _round_up(w2.shape[1], _LANE)        # 64 -> 128

    w2 = jnp.pad(w2, ((0, 0), (0, h2_pad - w2.shape[1])))
    b2 = jnp.pad(b2, ((0, 0), (0, h2_pad - b2.shape[1])))
    w3 = jnp.pad(w3, ((0, h2_pad - w3.shape[0]), (0, 0)))

    return {
        "w1": w1.astype(jnp.bfloat16), "b1": b1.astype(jnp.float32),
        "w2": w2.astype(jnp.bfloat16), "b2": b2.astype(jnp.float32),
        "w3": w3.astype(jnp.bfloat16), "b3": b3.astype(jnp.float32),
    }


def _choose_batch_tile(B, tile_b, d_in, d_out, x_itemsize, out_itemsize,
                       weight_bytes, num_cores):
    if B <= _LANE:
        # Small batch: whole (sublane-padded) batch in a single grid step.
        return _round_up(B, _SUBLANE)

    # Per-row VMEM cost: double-buffered x/out tiles + in-kernel intermediates
    # (h1/h2 in f32 + bf16, y in f32, bf16 copy of x). Weights are resident once.
    row_bytes = (2 * (x_itemsize * d_in + out_itemsize * d_out)
                 + (4 + 2) * HID1 + (4 + 2) * HID1
                 + 4 * d_out + 2 * d_in)
    budget = max(row_bytes * _LANE, _VMEM_TILE_BUDGET - weight_bytes)
    max_rows = max(_LANE, _round_down(budget // row_bytes, _LANE))

    tb = max(_LANE, _round_down(tile_b, _LANE))
    tb = min(tb, max_rows)
    if num_cores <= 1:
        # Single TensorCore (v5e/v6e): extra grid steps only add per-step overhead.
        return min(tb, _round_up(B, _LANE))
    # v7x: keep an even number of grid steps so both TensorCores stay busy, with
    # per-step tiles as large as the requested tile / VMEM budget allow.
    steps = _round_up(max(num_cores, _cdiv(B, tb)), num_cores)
    return max(_LANE, min(tb, _round_up(_cdiv(B, steps), _LANE)))


def dqn_forward(x, packed, *, tile_b=1024, out_dtype=jnp.float32):
    """x: (B, input_size) f32 or bf16. packed: output of pack_dqn_params."""
    B, d_in = x.shape
    w1, b1 = packed["w1"], packed["b1"]
    w2, b2 = packed["w2"], packed["b2"]
    w3, b3 = packed["w3"], packed["b3"]
    d_out = w3.shape[1]
    out_itemsize = jnp.dtype(out_dtype).itemsize

    weight_bytes = sum(int(v.size) * v.dtype.itemsize for v in packed.values())
    tb = _choose_batch_tile(B, tile_b, d_in, d_out, x.dtype.itemsize,
                            out_itemsize, weight_bytes, _num_tensorcores())
    grid = (_cdiv(B, tb),)   # ragged last block handled by Pallas masking (no pad/slice)

    flops = 2 * B * (d_in * HID1 + HID1 * HID1 + HID1 * d_out)
    bytes_accessed = (int(x.size) * x.dtype.itemsize
                      + B * d_out * out_itemsize + weight_bytes)

    in_specs = [
        pl.BlockSpec((tb, d_in), lambda i: (i, 0)),     # x: streamed over the batch
        pl.BlockSpec(w1.shape, lambda i: (0, 0)),       # weights/biases: VMEM-resident
        pl.BlockSpec(b1.shape, lambda i: (0, 0)),
        pl.BlockSpec(w2.shape, lambda i: (0, 0)),
        pl.BlockSpec(b2.shape, lambda i: (0, 0)),
        pl.BlockSpec(w3.shape, lambda i: (0, 0)),
        pl.BlockSpec(b3.shape, lambda i: (0, 0)),
    ]
    out_spec = pl.BlockSpec((tb, d_out), lambda i: (i, 0))

    return pl.pallas_call(
        dqn_kernel,
        out_shape=jax.ShapeDtypeStruct((B, d_out), out_dtype),
        grid=grid,
        in_specs=in_specs,
        out_specs=out_spec,
        compiler_params=pltpu.CompilerParams(
            dimension_semantics=("parallel",),
            vmem_limit_bytes=_VMEM_LIMIT,
        ),
        cost_estimate=pl.CostEstimate(flops=flops, transcendentals=0,
                                      bytes_accessed=bytes_accessed),
    )(x, w1, b1, w2, b2, w3, b3)


def dqn_reference(x, p):
    h1 = jnp.maximum(x @ p["w1"] + p["b1"], 0.0)
    h2 = jnp.maximum(h1 @ p["w2"] + p["b2"], 0.0)
    return h2 @ p["w3"] + p["b3"]


def _rel_err(out, ref):
    return float(jnp.max(jnp.abs(out.astype(jnp.float32) - ref))
                 / (jnp.max(jnp.abs(ref)) + 1e-6))


if __name__ == "__main__":
    # TODO(synk): only DQN.forward is implemented; CSV loading / replay / optimizer
    # from the original training script are out of kernel scope.
    key = jax.random.PRNGKey(0)
    k_params, k_x, k_x2, k_p2, k_x3 = jax.random.split(key, 5)

    # Small synthetic shapes consistent with the module:
    # input_size = number of numeric columns, output_size = number of cards (actions).
    input_size, output_size = 32, 256
    params = init_dqn_params(k_params, input_size, output_size)
    packed = pack_dqn_params(params)

    # 1) Small batch: whole batch in a single grid step.
    x = jax.random.normal(k_x, (8, input_size), jnp.float32)
    out = jax.block_until_ready(dqn_forward(x, packed))
    ref = dqn_reference(x, params)
    assert out.shape == (8, output_size)
    assert _rel_err(out, ref) < 2e-2, "small-batch mismatch vs. reference (bf16 tol)"

    # 2) Larger ragged batch: no host-side pad/slice; even 2-step grid on v7x,
    #    single big step on single-TensorCore chips.
    x2 = jax.random.normal(k_x2, (300, input_size), jnp.float32)
    out2 = jax.block_until_ready(dqn_forward(x2, packed))
    ref2 = dqn_reference(x2, params)
    assert out2.shape == (300, output_size)
    assert _rel_err(out2, ref2) < 2e-2, "tiled-batch mismatch vs. reference (bf16 tol)"

    # 3) Small action space (d_out << 128): output kept unpadded (full-width block).
    params_s = init_dqn_params(k_p2, input_size, 20)
    packed_s = pack_dqn_params(params_s)
    x3 = jax.random.normal(k_x3, (8, input_size), jnp.float32)
    out3 = jax.block_until_ready(dqn_forward(x3, packed_s))
    ref3 = dqn_reference(x3, params_s)
    assert out3.shape == (8, 20)
    assert _rel_err(out3, ref3) < 2e-2, "small-d_out mismatch vs. reference (bf16 tol)"

    print("KERNEL_OK")
</pallas_src>

<mosaic_0001>
module attributes {stable_mosaic.version = 11 : i64} {
  func.func @dqn_kernel(%arg0: i32, %arg1: memref<8x32xf32, #tpu.memory_space<vmem>>, %arg2: memref<32x128xbf16, #tpu.memory_space<vmem>>, %arg3: memref<1x128xf32, #tpu.memory_space<vmem>>, %arg4: memref<128x128xbf16, #tpu.memory_space<vmem>>, %arg5: memref<1x128xf32, #tpu.memory_space<vmem>>, %arg6: memref<128x256xbf16, #tpu.memory_space<vmem>>, %arg7: memref<1x256xf32, #tpu.memory_space<vmem>>, %arg8: memref<8x256xf32, #tpu.memory_space<vmem>>) attributes {dimension_semantics = [#tpu.dimension_semantics<parallel>], iteration_bounds = array<i64: 1>, scalar_prefetch = 0 : i64, scratch_operands = 0 : i64, tpu.core_type = #tpu.core_type<tc>, window_params = [{transform_indices = @transform_0, window_bounds = array<i64: 8, 32>}, {pipeline_mode = #tpu.pipeline_mode<synchronous>, transform_indices = @transform_1, window_bounds = array<i64: 32, 128>}, {pipeline_mode = #tpu.pipeline_mode<synchronous>, transform_indices = @transform_2, window_bounds = array<i64: 1, 128>}, {pipeline_mode = #tpu.pipeline_mode<synchronous>, transform_indices = @transform_3, window_bounds = array<i64: 128, 128>}, {pipeline_mode = #tpu.pipeline_mode<synchronous>, transform_indices = @transform_4, window_bounds = array<i64: 1, 128>}, {pipeline_mode = #tpu.pipeline_mode<synchronous>, transform_indices = @transform_5, window_bounds = array<i64: 128, 256>}, {pipeline_mode = #tpu.pipeline_mode<synchronous>, transform_indices = @transform_6, window_bounds = array<i64: 1, 256>}, {transform_indices = @transform_7, window_bounds = array<i64: 8, 256>}]} {
    %c0 = arith.constant 0 : index
    %c0_0 = arith.constant 0 : index
    %0 = vector.load %arg1[%c0, %c0_0] : memref<8x32xf32, #tpu.memory_space<vmem>>, vector<8x32xf32>
    %1 = arith.truncf %0 : vector<8x32xf32> to vector<8x32xbf16>
    %c0_1 = arith.constant 0 : index
    %c0_2 = arith.constant 0 : index
    %2 = vector.load %arg2[%c0_1, %c0_2] : memref<32x128xbf16, #tpu.memory_space<vmem>>, vector<32x128xbf16>
    %cst = arith.constant dense<0.000000e+00> : vector<8x128xf32>
    %3 = tpu.matmul %1, %2, %cst {dimension_numbers = #tpu.dot_dimension_numbers<[1], [0], [0], [1], [0, 0, 1, 1], [], []>} : vector<8x32xbf16>, vector<32x128xbf16>, vector<8x128xf32> -> vector<8x128xf32>
    %c0_3 = arith.constant 0 : index
    %c0_4 = arith.constant 0 : index
    %4 = vector.load %arg3[%c0_3, %c0_4] : memref<1x128xf32, #tpu.memory_space<vmem>>, vector<1x128xf32>
    %5 = vector.broadcast %4 : vector<1x128xf32> to vector<8x128xf32>
    %6 = arith.addf %3, %5 : vector<8x128xf32>
    %cst_5 = arith.constant 0.000000e+00 : f32
    %7 = vector.broadcast %cst_5 : f32 to vector<8x128xf32>
    %8 = arith.maximumf %6, %7 : vector<8x128xf32>
    %9 = arith.truncf %8 : vector<8x128xf32> to vector<8x128xbf16>
    %c0_6 = arith.constant 0 : index
    %c0_7 = arith.constant 0 : index
    %10 = vector.load %arg4[%c0_6, %c0_7] : memref<128x128xbf16, #tpu.memory_space<vmem>>, vector<128x128xbf16>
    %cst_8 = arith.constant dense<0.000000e+00> : vector<8x128xf32>
    %11 = tpu.matmul %9, %10, %cst_8 {dimension_numbers = #tpu.dot_dimension_numbers<[1], [0], [0], [1], [0, 0, 1, 1], [], []>} : vector<8x128xbf16>, vector<128x128xbf16>, vector<8x128xf32> -> vector<8x128xf32>
    %c0_9 = arith.constant 0 : index
    %c0_10 = arith.constant 0 : index
    %12 = vector.load %arg5[%c0_9, %c0_10] : memref<1x128xf32, #tpu.memory_space<vmem>>, vector<1x128xf32>
    %13 = vector.broadcast %12 : vector<1x128xf32> to vector<8x128xf32>
    %14 = arith.addf %11, %13 : vector<8x128xf32>
    %cst_11 = arith.constant 0.000000e+00 : f32
    %15 = vector.broadcast %cst_11 : f32 to vector<8x128xf32>
    %16 = arith.maximumf %14, %15 : vector<8x128xf32>
    %17 = arith.truncf %16 : vector<8x128xf32> to vector<8x128xbf16>
    %c0_12 = arith.constant 0 : index
    %c0_13 = arith.constant 0 : index
    %18 = vector.load %arg6[%c0_12, %c0_13] : memref<128x256xbf16, #tpu.memory_space<vmem>>, vector<128x256xbf16>
    %cst_14 = arith.constant dense<0.000000e+00> : vector<8x256xf32>
    %19 = tpu.matmul %17, %18, %cst_14 {dimension_numbers = #tpu.dot_dimension_numbers<[1], [0], [0], [1], [0, 0, 1, 1], [], []>} : vector<8x128xbf16>, vector<128x256xbf16>, vector<8x256xf32> -> vector<8x256xf32>
    %c0_15 = arith.constant 0 : index
    %c0_16 = arith.constant 0 : index
    %20 = vector.load %arg7[%c0_15, %c0_16] : memref<1x256xf32, #tpu.memory_space<vmem>>, vector<1x256xf32>
    %21 = vector.broadcast %20 : vector<1x256xf32> to vector<8x256xf32>
    %22 = arith.addf %19, %21 : vector<8x256xf32>
    %c0_17 = arith.constant 0 : index
    %c0_18 = arith.constant 0 : index
    %23 = vector.load %arg8[%c0_17, %c0_18] : memref<8x256xf32, #tpu.memory_space<vmem>>, vector<8x256xf32>
    tpu.vector_store %arg8[%c0_17, %c0_18], %22 {strides = array<i32>} : memref<8x256xf32, #tpu.memory_space<vmem>>, vector<8x256xf32>,
    return
  }
  func.func @transform_0(%arg0: i32) -> (i32, i32) {
    %c0_i32 = arith.constant 0 : i32
    %c0_i32_0 = arith.constant 0 : i32
    return %arg0, %c0_i32 : i32, i32
  }
  func.func @transform_1(%arg0: i32) -> (i32, i32) {
    %c0_i32 = arith.constant 0 : i32
    %c0_i32_0 = arith.constant 0 : i32
    %c0_i32_1 = arith.constant 0 : i32
    return %c0_i32, %c0_i32_0 : i32, i32
  }
  func.func @transform_2(%arg0: i32) -> (i32, i32) {
    %c0_i32 = arith.constant 0 : i32
    %c0_i32_0 = arith.constant 0 : i32
    %c0_i32_1 = arith.constant 0 : i32
    return %c0_i32, %c0_i32_0 : i32, i32
  }
  func.func @transform_3(%arg0: i32) -> (i32, i32) {
    %c0_i32 = arith.constant 0 : i32
    %c0_i32_0 = arith.constant 0 : i32
    %c0_i32_1 = arith.constant 0 : i32
    return %c0_i32, %c0_i32_0 : i32, i32
  }
  func.func @transform_4(%arg0: i32) -> (i32, i32) {
    %c0_i32 = arith.constant 0 : i32
    %c0_i32_0 = arith.constant 0 : i32
    %c0_i32_1 = arith.constant 0 : i32
    return %c0_i32, %c0_i32_0 : i32, i32
  }
  func.func @transform_5(%arg0: i32) -> (i32, i32) {
    %c0_i32 = arith.constant 0 : i32
    %c0_i32_0 = arith.constant 0 : i32
    %c0_i32_1 = arith.constant 0 : i32
    return %c0_i32, %c0_i32_0 : i32, i32
  }
  func.func @transform_6(%arg0: i32) -> (i32, i32) {
    %c0_i32 = arith.constant 0 : i32
    %c0_i32_0 = arith.constant 0 : i32
    %c0_i32_1 = arith.constant 0 : i32
    return %c0_i32, %c0_i32_0 : i32, i32
  }
  func.func @transform_7(%arg0: i32) -> (i32, i32) {
    %c0_i32 = arith.constant 0 : i32
    %c0_i32_0 = arith.constant 0 : i32
    return %arg0, %c0_i32 : i32, i32
  }
}

</mosaic_0001>

<bundles_post_ra>
// kernel: tpu_custom_call.1
= control target key start
LH: loop header
LB: loop body
LE: loop exit
PB: predicated region body
PF: predicated region fallthrough
CT: control target
= control target key end

     0   :  { %12 = vsyncpa [#allocation3], 0  ;;  %s744_s0 = inlined_call_operand.hbm [shape: f32[8,32], index: 0, kind: input, shape index: {}]   ;;  %s745_s1 = inlined_call_operand.hbm [shape: bf16[32,128], index: 1, kind: input, shape index: {}]   ;;  %s746_s2 = inlined_call_operand.vmem [shape: f32[1,128], index: 2, kind: input, shape index: {}]   ;;  %s747_s3 = inlined_call_operand.hbm [shape: bf16[128,128], index: 3, kind: input, shape index: {}]   ;;  %s748_s4 = inlined_call_operand.hbm [shape: f32[1,128], index: 4, kind: input, shape index: {}]   ;;  %s749_s5 = inlined_call_operand.hbm [shape: bf16[128,256], index: 5, kind: input, shape index: {}]   ;;  %s750_s6 = inlined_call_operand.vmem [shape: f32[1,256], index: 6, kind: input, shape index: {}]   ;;  %s751_s7 = inlined_call_operand.hbm [shape: f32[8,256], index: 7, kind: output, shape index: {}]  }
   0x1   :  { %13 = vsyncpa [#allocation6], 0 }
   0x2   :  { %14 = vsyncpa [#allocation9], 0  ;;  %s31_s26 = sshll.u32 %s745_s1, 4  ;;  %s32_s26 = int_to_ptr.hbm [resolvable:$true] %s31_s26 }
   0x3   :  { %15 = vsyncpa [#allocation4], 0  ;;  %s670_s27 = smov [#allocation5]   ;;  %s60_s8 = sshll.u32 %s748_s4, 4  ;;  %s61_s8 = int_to_ptr.hbm [resolvable:$true] %s60_s8 }
   0x4   :  { %s33_s28 = sshll.u32 %s670_s27, 4  ;;  %s671_s9 = smov 64   ;;  %s34_s28 = int_to_ptr.vmem [resolvable:$true] %s33_s28 }
   0x5   :  { %s672_s10 = smov 4   ;;  %s673_s11 = smov [#allocation8]  }
   0x6   :  { %39 = dma.hbm_to_vmem [thread:$0]  %s32_s26, 256, %s34_s28, [#allocation6], %s671_s9, %s671_s9, %s672_s10  }
   0x7   :  { %s62_s12 = sshll.u32 %s673_s11, 4  ;;  %s21_s15 = sshll.u32 %s744_s0, 4  ;;  %s63_s12 = int_to_ptr.vmem [resolvable:$true] %s62_s12  ;;  %s22_s15 = int_to_ptr.hbm [resolvable:$true] %s21_s15 }
   0x8   :  { %65 = dma.hbm_to_vmem [thread:$0]  %s61_s8, 16, %s63_s12, [#allocation9]  }
   0x9   :  { %s46_s17 = sshll.u32 %s747_s3, 4  ;;  %s674_s18 = smov [#allocation2]   ;;  %s47_s17 = int_to_ptr.hbm [resolvable:$true] %s46_s17 }
   0xa   :  { %s23_s19 = sshll.u32 %s674_s18, 4  ;;  %s675_s4 = smov [#allocation7]   ;;  %s24_s19 = int_to_ptr.vmem [resolvable:$true] %s23_s19 }
   0xb   :  { %26 = dma.hbm_to_vmem [thread:$0]  %s22_s15, 128, %s24_s19, [#allocation3]  }
   0xc   :  { %s48_s20 = sshll.u32 %s675_s4, 4  ;;  %s70_s23 = sshll.u32 %s749_s5, 4  ;;  %s49_s20 = int_to_ptr.vmem [resolvable:$true] %s48_s20  ;;  %s71_s23 = int_to_ptr.hbm [resolvable:$true] %s70_s23 }
   0xd   :  { %54 = dma.hbm_to_vmem [thread:$0]  %s47_s17, 1024, %s49_s20, [#allocation6], %s671_s9, %s671_s9, %s672_s10  }
   0xe   :  { %s676_s0 = smov [#allocation10]   ;;  %s677_s25 = smov 128  }
   0xf   :  { %s72_s24 = sshll.u32 %s676_s0, 4  ;;  %s678_s26 = smov 8   ;;  %s73_s24 = int_to_ptr.vmem [resolvable:$true] %s72_s24 }
  0x10   :  { %78 = dma.hbm_to_vmem [thread:$0]  %s71_s23, 2048, %s73_s24, [#allocation9], %s677_s25, %s677_s25, %s678_s26  }
  0x11   :  { %662 = dma.done.wait [#allocation3], 128  }
  0x12   :  { %663 = vsyncadd [#allocation3], 4294967168 }
  0x13   :  { %664 = dma.done.wait [#allocation6], 1280  }
  0x14   :  { %665 = vsyncadd [#allocation6], 4294966016 }
  0x15   :  { %666 = dma.done.wait [#allocation9], 2064  }
  0x16   :  { %667 = vsyncadd [#allocation9], 4294965232  ;;  %v481_v0 = vld [vmem:[#allocation5 + $0x8] sm:$0xff]  ;;  %v480_v2 = vld [vmem:[#allocation5] sm:$0xff]  ;;  %vm124_vm0 = vcmask 261120   ;;  %s679_s28 = smov [#allocation11]  }
  0x17   :  { %v489_v1 = vld [vmem:[#allocation7 + $0x38] sm:$0xff]  ;;  %134 = vmatpush.bf16.msra.mxu0 %v481_v0  ;;  %v102_v3 = vld [vmem:[#allocation2] sm:$0xff]  ;;  %v488_v4 = vld [vmem:[#allocation7 + $0x30] sm:$0xff]  ;;  %s361_s29 = sshll.u32 %s679_s28, 4  ;;  %s363_s9 = sshll.u32 %s751_s7, 4  ;;  %s362_s29 = int_to_ptr.vmem [resolvable:$true] %s361_s29  ;;  %s364_s9 = int_to_ptr.hbm [resolvable:$true] %s363_s9 }
  0x18   :  { %211 = vmatpush.bf16.msra.mxu1 %v489_v1  ;;  %v103_v5 = vpack.c.bf16 %v102_v3, %v102_v3  ;;  %v487_v6 = vld [vmem:[#allocation7 + $0x28] sm:$0xff]  ;;  %v486_v7 = vld [vmem:[#allocation7 + $0x20] sm:$0xff]  ;;  %v485_v8 = vld [vmem:[#allocation7 + $0x18] sm:$0xff] }
  0x19   :  { %v484_v9 = vld [vmem:[#allocation7 + $0x10] sm:$0xff]  ;;  %v483_v10 = vld [vmem:[#allocation7 + $0x8] sm:$0xff]  ;;  %v482_v11 = vld [vmem:[#allocation7] sm:$0xff] }
  0x1a   :  { %v474_v12 = vld [vmem:[#allocation10 + $0x70] sm:$0xf]  ;;  %v505_v13 = vld [vmem:[#allocation10 + $0x74] sm:$0xf0]  ;;  %v504_v14 = vld [vmem:[#allocation10 + $0x74] sm:$0xf] }
  0x1b   :  { %135 = vmatpush.bf16.msra.mxu0 %v480_v2  ;;  %v475_v15 = vor.u32 %v505_v13, %v474_v12  ;;  %v476_v16 = vld [vmem:[#allocation10 + $0x78] sm:$0xf0]  ;;  %v466_v17 = vld [vmem:[#allocation10 + $0x60] sm:$0xf]  ;;  %v503_v18 = vld [vmem:[#allocation10 + $0x64] sm:$0xf0] }
  0x1c   :  { %212 = vmatpush.bf16.msra.mxu1 %v488_v4  ;;  %v479_v19 = vor.u32 %v504_v14, %v476_v16  ;;  %v502_v20 = vld [vmem:[#allocation10 + $0x64] sm:$0xf]  ;;  %v468_v21 = vld [vmem:[#allocation10 + $0x68] sm:$0xf0]  ;;  %v467_v22 = vor.u32 %v503_v18, %v466_v17  ;;  %v458_v24 = vld [vmem:[#allocation10 + $0x50] sm:$0xf] }
  0x1d   :  { %328 = vmatpush.bf16.msra.mxu2 %v475_v15  ;;  %v471_v23 = vor.u32 %v502_v20, %v468_v21  ;;  %v501_v25 = vld [vmem:[#allocation10 + $0x54] sm:$0xf0]  ;;  %v500_v26 = vld [vmem:[#allocation10 + $0x54] sm:$0xf]  ;;  %v460_v27 = vld [vmem:[#allocation10 + $0x58] sm:$0xf0] }
  0x1e   :  { %383 = vmatmul.msk.bf16.vlgmr.msra.gmra.mxu0 %vm124_vm0, %v103_v5  ;;  %341 = vmatpush.bf16.msra.mxu3 %v479_v19  ;;  %v459_v28 = vor.u32 %v501_v25, %v458_v24  ;;  %v463_v29 = vor.u32 %v500_v26, %v460_v27  ;;  %v450_v30 = vld [vmem:[#allocation10 + $0x40] sm:$0xf]  ;;  %v499_v31 = vld [vmem:[#allocation10 + $0x44] sm:$0xf0]  ;;  %v498_v32 = vld [vmem:[#allocation10 + $0x44] sm:$0xf] }
  0x1f   :  { %v452_v33 = vld [vmem:[#allocation10 + $0x48] sm:$0xf0]  ;;  %v451_v34 = vor.u32 %v499_v31, %v450_v30  ;;  %v442_v36 = vld [vmem:[#allocation10 + $0x30] sm:$0xf]  ;;  %v497_v37 = vld [vmem:[#allocation10 + $0x34] sm:$0xf0] }
  0x20   :  { %213 = vmatpush.bf16.msra.mxu1 %v487_v6  ;;  %v455_v35 = vor.u32 %v498_v32, %v452_v33  ;;  %v496_v38 = vld [vmem:[#allocation10 + $0x34] sm:$0xf]  ;;  %v444_v39 = vld [vmem:[#allocation10 + $0x38] sm:$0xf0]  ;;  %v443_v40 = vor.u32 %v497_v37, %v442_v36  ;;  %v434_v42 = vld [vmem:[#allocation10 + $0x20] sm:$0xf] }
  0x21   :  { %329 = vmatpush.bf16.msra.mxu2 %v467_v22  ;;  %v447_v41 = vor.u32 %v496_v38, %v444_v39  ;;  %v495_v43 = vld [vmem:[#allocation10 + $0x24] sm:$0xf0]  ;;  %v494_v44 = vld [vmem:[#allocation10 + $0x24] sm:$0xf]  ;;  %v436_v45 = vld [vmem:[#allocation10 + $0x28] sm:$0xf0] }
  0x22   :  { %342 = vmatpush.bf16.msra.mxu3 %v471_v23  ;;  %v435_v46 = vor.u32 %v495_v43, %v434_v42  ;;  %v439_v47 = vor.u32 %v494_v44, %v436_v45  ;;  %v516_v48 = vld [vmem:[%s746_s2] ss:$0 sm:$0xff]  ;;  %v426_v54 = vld [vmem:[#allocation10 + $0x10] sm:$0xf]  ;;  %v493_v55 = vld [vmem:[#allocation10 + $0x14] sm:$0xf0] }
  0x23   :  { %v492_v56 = vld [vmem:[#allocation10 + $0x14] sm:$0xf]  ;;  %v427_v57 = vor.u32 %v493_v55, %v426_v54  ;;  %v428_v58 = vld [vmem:[#allocation10 + $0x18] sm:$0xf0]  ;;  %v418_v60 = vld [vmem:[#allocation10] sm:$0xf] }
  0x24   :  { %214 = vmatpush.bf16.msra.mxu1 %v486_v7  ;;  %v431_v59 = vor.u32 %v492_v56, %v428_v58  ;;  %v491_v61 = vld [vmem:[#allocation10 + $0x4] sm:$0xf0]  ;;  %v490_v62 = vld [vmem:[#allocation10 + $0x4] sm:$0xf]  ;;  %v420_v0 = vld [vmem:[#allocation10 + $0x8] sm:$0xf0] }
  0x25   :  { %330 = vmatpush.bf16.msra.mxu2 %v459_v28  ;;  %v419_v63 = vor.u32 %v491_v61, %v418_v60  ;;  %v423_v1 = vor.u32 %v490_v62, %v420_v0  ;;  %v517_v2 = vld [vmem:[#allocation8] ss:$0 sm:$0xff] }
  0x26   :  { %343 = vmatpush.bf16.msra.mxu3 %v463_v29 }
  0x28   :  { %215 = vmatpush.bf16.msra.mxu1 %v485_v8  ;;  %v242_v8 = vld [vmem:[%s750_s6] sm:$0x3] }
  0x29   :  { %331 = vmatpush.bf16.msra.mxu2 %v451_v34 }
  0x2a   :  { %344 = vmatpush.bf16.msra.mxu3 %v455_v35 }
  0x2c   :  { %216 = vmatpush.bf16.msra.mxu1 %v484_v9  ;;  %v244_v9 = vperm.slane %v242_v8, 0 }
  0x2d   :  { %332 = vmatpush.bf16.msra.mxu2 %v443_v40 }
  0x2e   :  { %345 = vmatpush.bf16.msra.mxu3 %v447_v41 }
  0x30   :  { %217 = vmatpush.bf16.msra.mxu1 %v483_v10  ;;  %v245_v10 = vperm.slane %v242_v8, 1 }
  0x31   :  { %333 = vmatpush.bf16.msra.mxu2 %v435_v46 }
  0x32   :  { %346 = vmatpush.bf16.msra.mxu3 %v439_v47 }
  0x34   :  { %218 = vmatpush.bf16.msra.mxu1 %v482_v11 }
  0x35   :  { %334 = vmatpush.bf16.msra.mxu2 %v427_v57 }
  0x36   :  { %347 = vmatpush.bf16.msra.mxu3 %v431_v59 }
  0x39   :  { %335 = vmatpush.bf16.msra.mxu2 %v419_v63 }
  0x3a   :  { %348 = vmatpush.bf16.msra.mxu3 %v423_v1 }
  0x9b   :  { %v137_v49 = vpop.f32.mrf.mxu0 }
  0x9c   :  { %v138_v50 = vadd.f32 %v516_v48, %v137_v49 }
  0x9e   :  { %v141_v51 = vmax.f32 %v138_v50, 0.0 }
  0xa0   :  { %v142_v52 = vpack.c.bf16 %v141_v51, %v141_v51 }
  0xa2   :  { %219 = vmatmul.bf16.vlgmr.msra.gmra.mxu1 %v142_v52 }
  0xa3   :  { %v139_v53 = vpop.f32.mrf.mxu0 }
 0x11f   :  { %v220_v3 = vpop.f32.mrf.mxu1 }
 0x120   :  { %v221_v4 = vadd.f32 %v517_v2, %v220_v3 }
 0x122   :  { %v224_v5 = vmax.f32 %v221_v4, 0.0 }
 0x124   :  { %v225_v6 = vpack.c.bf16 %v224_v5, %v224_v5 }
 0x126   :  { %336 = vmatmul.bf16.vlgmr.msra.gmra.mxu2 %v225_v6  ;;  %349 = vmatmul.bf16.vlgmr.msra.gmra.mxu3 %v225_v6 }
 0x127   :  { %v222_v7 = vpop.f32.mrf.mxu1 }
 0x1a9   :  { %v337_v11 = vpop.f32.mrf.mxu2  ;;  %v350_v12 = vpop.f32.mrf.mxu3 }
 0x1aa   :  { %v338_v13 = vadd.f32 %v337_v11, %v244_v9  ;;  %v351_v14 = vadd.f32 %v350_v12, %v245_v10 }
 0x1ac   :  { %354 = vst [vmem:[#allocation11] sm:$0xff] %v338_v13 }
 0x1ad   :  { %355 = vst [vmem:[#allocation11 + $0x8] sm:$0xff] %v351_v14 }
 0x1ae   :  { %366 = dma.vmem_to_hbm [thread:$0]  %s362_s29, 256, %s364_s9, [#allocation4]  }
 0x1b1   :  { %v339_v15 = vpop.f32.mrf.mxu2  ;;  %v352_v16 = vpop.f32.mrf.mxu3 }
 0x1b2   :  { %668 = dma.done.wait [#allocation4], 256  }
 0x1b3   :  { %669 = vsyncadd [#allocation4], 4294967040 }
 0x1b4   :  { %371 = vsyncpa [#allocation3], 1 }
 0x1b5   :  { %372 = vsyncpa [#allocation6], 1 }
 0x1b6   :  { %373 = vsyncpa [#allocation9], 1 }
 0x1b7   :  { %374 = vsyncpa [#allocation4], 1 }

</bundles_post_ra>
